<compile_context>
chip_gen: v6e
topology: v6e:2x2x1
jax: 0.10.0
libtpu: 0.0.40
codegen_flags: <defaults>
</compile_context>

<pallas_src>
import functools
import math

import jax
import jax.numpy as jnp
from jax.experimental import pallas as pl
from jax.experimental.pallas import tpu as pltpu

LANE = 128      # lane width: last-dim padding target
SUBLANE = 8     # sublane granularity for the row tile


def _round_up(x, m):
    return (x + m - 1) // m * m


def _mlp_kernel(num_layers, sigmoid_output, compute_dtype, *refs):
    """refs = (x_ref, w0, b0, w1, b1, ..., o_ref)."""
    x_ref = refs[0]
    o_ref = refs[-1]
    param_refs = refs[1:-1]
    assert len(param_refs) == 2 * num_layers

    h = x_ref[...]  # (tm, C0p) in compute_dtype
    for i in range(num_layers):
        w_ref = param_refs[2 * i]       # (Cip, Cop)   compute_dtype
        b_ref = param_refs[2 * i + 1]   # (1,  Cop)    float32
        # MXU matmul in compute_dtype inputs, f32 accumulation.
        h = jnp.dot(h.astype(compute_dtype), w_ref[...],
                    preferred_element_type=jnp.float32)
        # Bias add / ReLU / sigmoid stay in f32 vregs (v5e has no bf16 VPU/EUP).
        h = h + b_ref[...]
        if i < num_layers - 1:
            h = jnp.maximum(h, 0.0)
    if sigmoid_output:
        h = jax.nn.sigmoid(h)
    o_ref[...] = h.astype(o_ref.dtype)


def conv2d_inplace_linear_mlp(x, weights, biases, *, sigmoid_output=True,
                              tm=512, compute_dtype=jnp.float32):
    """Fused SAM mask-decoder MLP.

    x:       (..., C_in)                     float32
    weights: list of (C_in_i, C_out_i)       float32 (already transposed vs torch)
    biases:  list of (C_out_i,)              float32
    returns: (..., C_out_last)               float32
    """
    num_layers = len(weights)
    lead_shape = x.shape[:-1]
    c_in = x.shape[-1]
    c_out = weights[-1].shape[1]
    M = math.prod(lead_shape) if lead_shape else 1

    # --- channel padding to lane multiples (exact: zero weights/bias) -------
    dims = [c_in] + [w.shape[1] for w in weights]
    dims_p = [_round_up(d, LANE) for d in dims]

    # --- row padding / tile sizing ------------------------------------------
    tm_eff = max(SUBLANE, min(tm, _round_up(M, SUBLANE)))
    M_pad = _round_up(M, tm_eff)
    grid = (M_pad // tm_eff,)

    cd_bytes = jnp.dtype(compute_dtype).itemsize

    x2d = x.reshape(M, c_in)
    x2d = jnp.pad(x2d, ((0, M_pad - M), (0, dims_p[0] - c_in)))
    x2d = x2d.astype(compute_dtype)

    w_p, b_p = [], []
    for i, (w, b) in enumerate(zip(weights, biases)):
        wp = jnp.pad(w, ((0, dims_p[i] - w.shape[0]),
                         (0, dims_p[i + 1] - w.shape[1]))).astype(compute_dtype)
        bp = jnp.pad(b, (0, dims_p[i + 1] - b.shape[0]))
        bp = bp.astype(jnp.float32).reshape(1, -1)
        w_p.append(wp)
        b_p.append(bp)

    kernel = functools.partial(_mlp_kernel, num_layers, sigmoid_output,
                               compute_dtype)

    # --- BlockSpecs: x/out tiled over rows; weights/biases whole-array blocks
    # with a constant index_map (stay resident across the row grid). ---------
    in_specs = [pl.BlockSpec((tm_eff, dims_p[0]), lambda i: (i, 0))]
    for wp, bp in zip(w_p, b_p):
        in_specs.append(pl.BlockSpec(wp.shape, lambda i: (0, 0)))
        in_specs.append(pl.BlockSpec(bp.shape, lambda i: (0, 0)))
    out_spec = pl.BlockSpec((tm_eff, dims_p[-1]), lambda i: (i, 0))

    flat_params = []
    for wp, bp in zip(w_p, b_p):
        flat_params.extend([wp, bp])

    # --- advisory cost estimate ---------------------------------------------
    flops = 2 * M * sum(w.shape[0] * w.shape[1] for w in weights)
    transcendentals = M * c_out if sigmoid_output else 0
    bytes_accessed = (x2d.size * cd_bytes
                      + M_pad * dims_p[-1] * 4
                      + sum(wp.size * cd_bytes for wp in w_p)
                      + sum(bp.size * 4 for bp in b_p))
    cost = pl.CostEstimate(flops=flops,
                           transcendentals=transcendentals,
                           bytes_accessed=bytes_accessed)

    # --- VMEM budget: double-buffered x/out tiles + resident params + f32
    # intermediates.  Only raise the scoped limit if we actually need it, and
    # stay below v7x's 64 MiB physical VMEM. ---------------------------------
    est_vmem = (2 * tm_eff * (dims_p[0] + dims_p[-1]) * max(cd_bytes, 4)
                + sum(2 * wp.size * cd_bytes for wp in w_p)
                + sum(2 * bp.size * 4 for bp in b_p)
                + 4 * tm_eff * max(dims_p) * 4)
    vmem_limit = None
    if est_vmem > (30 << 20):
        vmem_limit = min(est_vmem + (4 << 20), 60 << 20)

    out2d = pl.pallas_call(
        kernel,
        out_shape=jax.ShapeDtypeStruct((M_pad, dims_p[-1]), jnp.float32),
        grid_spec=pltpu.PrefetchScalarGridSpec(
            num_scalar_prefetch=0,
            grid=grid,
            in_specs=in_specs,
            out_specs=out_spec,
        ),
        compiler_params=pltpu.CompilerParams(
            dimension_semantics=("parallel",),   # row tiles shard across TCs on v7x
            vmem_limit_bytes=vmem_limit,
        ),
        cost_estimate=cost,
    )(x2d, *flat_params)

    # Slice off row/channel padding and restore the leading shape.
    return out2d[:M, :c_out].reshape(*lead_shape, c_out)


def reference_mlp(x, weights, biases, sigmoid_output=True):
    h = x
    n = len(weights)
    for i, (w, b) in enumerate(zip(weights, biases)):
        h = h @ w + b
        if i < n - 1:
            h = jnp.maximum(h, 0.0)
    if sigmoid_output:
        h = jax.nn.sigmoid(h)
    return h


if __name__ == "__main__":
    # SAM mask-decoder-style MLP: input_dim -> hidden_dim -> hidden_dim -> output_dim
    B, N = 2, 128          # batch, tokens (M = 256 rows -> grid of 2 with tm=128)
    input_dim = 32
    hidden_dim = 64
    output_dim = 32
    num_layers = 3
    sigmoid_output = True

    layer_dims = [(input_dim, hidden_dim),
                  (hidden_dim, hidden_dim),
                  (hidden_dim, output_dim)]
    assert len(layer_dims) == num_layers

    key = jax.random.PRNGKey(0)
    keys = jax.random.split(key, 1 + 2 * num_layers)

    x = jax.random.normal(keys[0], (B, N, input_dim), dtype=jnp.float32)

    weights, biases = [], []
    for li, (cin, cout) in enumerate(layer_dims):
        wkey = keys[1 + 2 * li]
        bkey = keys[2 + 2 * li]
        w = jax.random.normal(wkey, (cin, cout), dtype=jnp.float32) * (1.0 / cin) ** 0.5
        b = jax.random.normal(bkey, (cout,), dtype=jnp.float32) * 0.01
        weights.append(w)
        biases.append(b)

    ref = reference_mlp(x, weights, biases, sigmoid_output=sigmoid_output)

    # f32 path (tight check).
    out_f32 = conv2d_inplace_linear_mlp(
        x, weights, biases, sigmoid_output=sigmoid_output,
        tm=128, compute_dtype=jnp.float32)
    out_f32 = jax.block_until_ready(out_f32)
    assert out_f32.shape == (B, N, output_dim)
    assert jnp.allclose(out_f32, ref, atol=1e-5, rtol=1e-5), "f32 mismatch vs reference"

    # bf16 MXU path (f32 accumulation + f32 activations), looser tolerance.
    out_bf16 = conv2d_inplace_linear_mlp(
        x, weights, biases, sigmoid_output=sigmoid_output,
        tm=128, compute_dtype=jnp.bfloat16)
    out_bf16 = jax.block_until_ready(out_bf16)
    assert out_bf16.shape == (B, N, output_dim)
    assert jnp.allclose(out_bf16, ref, atol=2e-2, rtol=0.0), "bf16 mismatch vs reference"

    print("KERNEL_OK")
</pallas_src>

<mosaic_0001>
module attributes {stable_mosaic.version = 11 : i64} {
  func.func @_mlp_kernel(%arg0: i32, %arg1: memref<128x128xf32, #tpu.memory_space<vmem>>, %arg2: memref<128x128xf32, #tpu.memory_space<vmem>>, %arg3: memref<1x128xf32, #tpu.memory_space<vmem>>, %arg4: memref<128x128xf32, #tpu.memory_space<vmem>>, %arg5: memref<1x128xf32, #tpu.memory_space<vmem>>, %arg6: memref<128x128xf32, #tpu.memory_space<vmem>>, %arg7: memref<1x128xf32, #tpu.memory_space<vmem>>, %arg8: memref<128x128xf32, #tpu.memory_space<vmem>>) attributes {dimension_semantics = [#tpu.dimension_semantics<parallel>], iteration_bounds = array<i64: 2>, scalar_prefetch = 0 : i64, scratch_operands = 0 : i64, tpu.core_type = #tpu.core_type<tc>, window_params = [{transform_indices = @transform_0, window_bounds = array<i64: 128, 128>}, {pipeline_mode = #tpu.pipeline_mode<synchronous>, transform_indices = @transform_1, window_bounds = array<i64: 128, 128>}, {pipeline_mode = #tpu.pipeline_mode<synchronous>, transform_indices = @transform_2, window_bounds = array<i64: 1, 128>}, {pipeline_mode = #tpu.pipeline_mode<synchronous>, transform_indices = @transform_3, window_bounds = array<i64: 128, 128>}, {pipeline_mode = #tpu.pipeline_mode<synchronous>, transform_indices = @transform_4, window_bounds = array<i64: 1, 128>}, {pipeline_mode = #tpu.pipeline_mode<synchronous>, transform_indices = @transform_5, window_bounds = array<i64: 128, 128>}, {pipeline_mode = #tpu.pipeline_mode<synchronous>, transform_indices = @transform_6, window_bounds = array<i64: 1, 128>}, {transform_indices = @transform_7, window_bounds = array<i64: 128, 128>}]} {
    %c0 = arith.constant 0 : index
    %c0_0 = arith.constant 0 : index
    %0 = vector.load %arg1[%c0, %c0_0] : memref<128x128xf32, #tpu.memory_space<vmem>>, vector<128x128xf32>
    %c0_1 = arith.constant 0 : index
    %c0_2 = arith.constant 0 : index
    %1 = vector.load %arg2[%c0_1, %c0_2] : memref<128x128xf32, #tpu.memory_space<vmem>>, vector<128x128xf32>
    %cst = arith.constant dense<0.000000e+00> : vector<128x128xf32>
    %2 = tpu.matmul %0, %1, %cst {dimension_numbers = #tpu.dot_dimension_numbers<[1], [0], [0], [1], [0, 0, 1, 1], [], []>} : vector<128x128xf32>, vector<128x128xf32>, vector<128x128xf32> -> vector<128x128xf32>
    %c0_3 = arith.constant 0 : index
    %c0_4 = arith.constant 0 : index
    %3 = vector.load %arg3[%c0_3, %c0_4] : memref<1x128xf32, #tpu.memory_space<vmem>>, vector<1x128xf32>
    %4 = vector.broadcast %3 : vector<1x128xf32> to vector<128x128xf32>
    %5 = arith.addf %2, %4 : vector<128x128xf32>
    %cst_5 = arith.constant 0.000000e+00 : f32
    %6 = vector.broadcast %cst_5 : f32 to vector<128x128xf32>
    %7 = arith.maximumf %5, %6 : vector<128x128xf32>
    %c0_6 = arith.constant 0 : index
    %c0_7 = arith.constant 0 : index
    %8 = vector.load %arg4[%c0_6, %c0_7] : memref<128x128xf32, #tpu.memory_space<vmem>>, vector<128x128xf32>
    %cst_8 = arith.constant dense<0.000000e+00> : vector<128x128xf32>
    %9 = tpu.matmul %7, %8, %cst_8 {dimension_numbers = #tpu.dot_dimension_numbers<[1], [0], [0], [1], [0, 0, 1, 1], [], []>} : vector<128x128xf32>, vector<128x128xf32>, vector<128x128xf32> -> vector<128x128xf32>
    %c0_9 = arith.constant 0 : index
    %c0_10 = arith.constant 0 : index
    %10 = vector.load %arg5[%c0_9, %c0_10] : memref<1x128xf32, #tpu.memory_space<vmem>>, vector<1x128xf32>
    %11 = vector.broadcast %10 : vector<1x128xf32> to vector<128x128xf32>
    %12 = arith.addf %9, %11 : vector<128x128xf32>
    %cst_11 = arith.constant 0.000000e+00 : f32
    %13 = vector.broadcast %cst_11 : f32 to vector<128x128xf32>
    %14 = arith.maximumf %12, %13 : vector<128x128xf32>
    %c0_12 = arith.constant 0 : index
    %c0_13 = arith.constant 0 : index
    %15 = vector.load %arg6[%c0_12, %c0_13] : memref<128x128xf32, #tpu.memory_space<vmem>>, vector<128x128xf32>
    %cst_14 = arith.constant dense<0.000000e+00> : vector<128x128xf32>
    %16 = tpu.matmul %14, %15, %cst_14 {dimension_numbers = #tpu.dot_dimension_numbers<[1], [0], [0], [1], [0, 0, 1, 1], [], []>} : vector<128x128xf32>, vector<128x128xf32>, vector<128x128xf32> -> vector<128x128xf32>
    %c0_15 = arith.constant 0 : index
    %c0_16 = arith.constant 0 : index
    %17 = vector.load %arg7[%c0_15, %c0_16] : memref<1x128xf32, #tpu.memory_space<vmem>>, vector<1x128xf32>
    %18 = vector.broadcast %17 : vector<1x128xf32> to vector<128x128xf32>
    %19 = arith.addf %16, %18 : vector<128x128xf32>
    %20 = arith.negf %19 : vector<128x128xf32>
    %21 = math.exp %20 : vector<128x128xf32>
    %cst_17 = arith.constant 1.000000e+00 : f32
    %22 = vector.broadcast %cst_17 : f32 to vector<128x128xf32>
    %23 = arith.addf %22, %21 : vector<128x128xf32>
    %24 = arith.divf %22, %23 : vector<128x128xf32>
    %c0_18 = arith.constant 0 : index
    %c0_19 = arith.constant 0 : index
    %25 = vector.load %arg8[%c0_18, %c0_19] : memref<128x128xf32, #tpu.memory_space<vmem>>, vector<128x128xf32>
    tpu.vector_store %arg8[%c0_18, %c0_19], %24 {strides = array<i32>} : memref<128x128xf32, #tpu.memory_space<vmem>>, vector<128x128xf32>,
    return
  }
  func.func @transform_0(%arg0: i32) -> (i32, i32) {
    %c0_i32 = arith.constant 0 : i32
    %c0_i32_0 = arith.constant 0 : i32
    return %arg0, %c0_i32 : i32, i32
  }
  func.func @transform_1(%arg0: i32) -> (i32, i32) {
    %c0_i32 = arith.constant 0 : i32
    %c0_i32_0 = arith.constant 0 : i32
    %c0_i32_1 = arith.constant 0 : i32
    return %c0_i32, %c0_i32_0 : i32, i32
  }
  func.func @transform_2(%arg0: i32) -> (i32, i32) {
    %c0_i32 = arith.constant 0 : i32
    %c0_i32_0 = arith.constant 0 : i32
    %c0_i32_1 = arith.constant 0 : i32
    return %c0_i32, %c0_i32_0 : i32, i32
  }
  func.func @transform_3(%arg0: i32) -> (i32, i32) {
    %c0_i32 = arith.constant 0 : i32
    %c0_i32_0 = arith.constant 0 : i32
    %c0_i32_1 = arith.constant 0 : i32
    return %c0_i32, %c0_i32_0 : i32, i32
  }
  func.func @transform_4(%arg0: i32) -> (i32, i32) {
    %c0_i32 = arith.constant 0 : i32
    %c0_i32_0 = arith.constant 0 : i32
    %c0_i32_1 = arith.constant 0 : i32
    return %c0_i32, %c0_i32_0 : i32, i32
  }
  func.func @transform_5(%arg0: i32) -> (i32, i32) {
    %c0_i32 = arith.constant 0 : i32
    %c0_i32_0 = arith.constant 0 : i32
    %c0_i32_1 = arith.constant 0 : i32
    return %c0_i32, %c0_i32_0 : i32, i32
  }
  func.func @transform_6(%arg0: i32) -> (i32, i32) {
    %c0_i32 = arith.constant 0 : i32
    %c0_i32_0 = arith.constant 0 : i32
    %c0_i32_1 = arith.constant 0 : i32
    return %c0_i32, %c0_i32_0 : i32, i32
  }
  func.func @transform_7(%arg0: i32) -> (i32, i32) {
    %c0_i32 = arith.constant 0 : i32
    %c0_i32_0 = arith.constant 0 : i32
    return %arg0, %c0_i32 : i32, i32
  }
}

</mosaic_0001>

<bundles_post_ra>
// kernel: tpu_custom_call.1
= control target key start
LH: loop header
LB: loop body
LE: loop exit
PB: predicated region body
PF: predicated region fallthrough
CT: control target
= control target key end

     0   :  { %s2180_s0 = inlined_call_operand.hbm [shape: f32[256,128], index: 0, kind: input, shape index: {}]   ;;  %s2181_s1 = inlined_call_operand.hbm [shape: f32[128,128], index: 1, kind: input, shape index: {}]   ;;  %s2182_s2 = inlined_call_operand.vmem [shape: f32[1,128], index: 2, kind: input, shape index: {}]   ;;  %s2183_s3 = inlined_call_operand.hbm [shape: f32[128,128], index: 3, kind: input, shape index: {}]   ;;  %s2184_s4 = inlined_call_operand.vmem [shape: f32[1,128], index: 4, kind: input, shape index: {}]   ;;  %s2185_s5 = inlined_call_operand.hbm [shape: f32[128,128], index: 5, kind: input, shape index: {}]   ;;  %s2186_s6 = inlined_call_operand.vmem [shape: f32[1,128], index: 6, kind: input, shape index: {}]   ;;  %s2187_s7 = inlined_call_operand.hbm [shape: f32[256,128], index: 7, kind: output, shape index: {}]  }
   0x1   :  { %2194 = sst [smem:[#allocation15_spill]] %s2181_s1 }
   0x2   :  { %12 = vsyncpa [#allocation3], 0 }
   0x3   :  { %14 = vsyncpa [#allocation3 + $0x1], 0 }
   0x4   :  { %15 = vsyncpa [#allocation6], 0 }
   0x5   :  { %16 = vsyncpa [#allocation9], 0 }
   0x6   :  { %17 = vsyncpa [#allocation4], 0 }
   0x7   :  { %19 = vsyncpa [#allocation4 + $0x1], 0  ;;  %s1834_s24 = smov 0   ;;  %s1836_s25 = smov 0  }
   0x8   :  { %s1838_s26 = smov 0   ;;  %s1840_s27 = smov 0  }
   0x9 LB: > { %s1855_s28 = sadd.s32 4294967295, %s1783_s27   ;;  %s1123_s29 = sadd.s32 4294967294, %s1783_s27   ;;  %s1783_s27 = sphi %s1840_s27, %s2216_s27   ;;  %s1779_s26 = sphi %s1838_s26, %s2215_s26   ;;  %s1775_s25 = sphi %s1836_s25, %s2214_s25   ;;  %s1771_s24 = sphi %s1834_s24, %s2213_s24  }
   0xa   : > { %p45_p0 = scmp.ne.s32.totalorder %s1775_s25, %s1771_s24  ;;  %p2188_p1 = scmp.eq.s32.totalorder %s1855_s28, 0 }
   0xb   : > { %p195_p2 = scmp.eq.s32.totalorder %s1855_s28, 1  ;;  %p201_p3 = scmp.eq.s32.totalorder %s1123_s29, 1 }
   0xc   : > { %p1864_p4 = por %p2188_p1, %p45_p0  ;;  %p1124_p5 = scmp.ge.s32.totalorder %s1783_s27, 1 }
   0xd   : > { %p1869_p6 = por %p201_p3, %p45_p0  ;;  %p208_p7 = scmp.lt.s32.totalorder %s1783_s27, 3 }
   0xe   : > { %s2195_s30 = scalar_select %p1864_p4, 1, 0 }
   0xf   : > { %s2196_s8 = scalar_select %p1869_p6, 1, 0 }
  0x10   : > { %p1874_p8 = pnand %p1124_p5, %p208_p7  ;;  %s1785_s10 = smov [#allocation5]  }
  0x11   : > { %s220_s11 = sshll.u32 %s1785_s10, 4  ;;  %s1786_s13 = smov [#allocation7]   ;;  %s221_s11 = int_to_ptr.vmem [resolvable:$true] %s220_s11 }
  0x12   : > { %s2197_s9 = scalar_select %p1874_p8, 1, 0 }
  0x13   : > { %p1476_p9 = pneg %p1874_p8  ;;  %s236_s14 = sshll.u32 %s1786_s13, 4  ;;  %s237_s14 = int_to_ptr.vmem [resolvable:$true] %s236_s14 }
  0x14   : > { %s1787_s15 = smov [#allocation8]   ;;  %s1616_s17 = scalar_lea.vmem %s221_s11, 2048 }
  0x15   : > { %p1883_p11 = pnand %p1476_p9, %p2188_p1  ;;  %s252_s16 = sshll.u32 %s1787_s15, 4  ;;  %s253_s16 = int_to_ptr.vmem [resolvable:$true] %s252_s16 }
  0x16   : > { %p1617_p13 = scmp.ne.s32.totalorder %s221_s11, %s1616_s17  ;;  %p1624_p5 = scmp.lt.s32.totalorder %s221_s11, %s221_s11 }
  0x17   : > { %p1607_p12 = pneg %p1883_p11  ;;  %p1625_p7 = scmp.lt.s32.totalorder %s1616_s17, %s1616_s17 }
  0x19   : > { %p1619_p0 = pnand %p1617_p13, %p1607_p12  ;;  %p1626_p9 = por %p1625_p7, %p1624_p5 }
  0x1b   : > { %p1620_p3 = pneg %p1619_p0 }
  0x1d   : > { %p1627_p10 = pnand %p1626_p9, %p1620_p3 }
  0x1f   : > { %1630 = shalt.err (!%p1627_p10)
}
  0x20   : > { %s2189_s18 = smov 128   ;;  %s2190_s19 = smov 8  }
  0x21   : > { %s2199_s1 = sld [smem:[#allocation15_spill]]  ;;  %s1642_s22 = scalar_lea.vmem %s237_s14, 2048 }
  0x22   : > { %p1643_p13 = scmp.ne.s32.totalorder %s237_s14, %s1642_s22  ;;  %p1650_p3 = scmp.lt.s32.totalorder %s237_s14, %s237_s14 }
  0x23   : > { %p1651_p10 = scmp.lt.s32.totalorder %s1642_s22, %s1642_s22 }
  0x24   : > { %p1645_p0 = pnand %p1643_p13, %p1607_p12 }
  0x25   : > { %p1652_p7 = por %p1651_p10, %p1650_p3 }
  0x26   : > { %p1646_p5 = pneg %p1645_p0 }
  0x27   : > { %1479 = dma.hbm_to_vmem [thread:$0]  (!%p1883_p11), %s2199_s1, 2048, %s221_s11, [#allocation6], %s2189_s18, %s2189_s18, %s2190_s19  }
  0x28   : > { %p1653_p9 = pnand %p1652_p7, %p1646_p5 }
  0x2a   : > { %1656 = shalt.err (!%p1653_p9)
}
  0x2b   : > { %1482 = dma.hbm_to_vmem [thread:$0]  (!%p1883_p11), %s2183_s3, 2048, %s237_s14, [#allocation6], %s2189_s18, %s2189_s18, %s2190_s19  }
  0x2c   : > { %s1668_s10 = scalar_lea.vmem %s253_s16, 2048  ;;  %p1676_p3 = scmp.lt.s32.totalorder %s253_s16, %s253_s16 }
  0x2d   : > { %p1669_p1 = scmp.ne.s32.totalorder %s253_s16, %s1668_s10  ;;  %p1677_p5 = scmp.lt.s32.totalorder %s1668_s10, %s1668_s10 }
  0x2f   : > { %p1671_p13 = pnand %p1669_p1, %p1607_p12  ;;  %p1678_p10 = por %p1677_p5, %p1676_p3 }
  0x31   : > { %p1672_p0 = pneg %p1671_p13 }
  0x33   : > { %p1679_p7 = pnand %p1678_p10, %p1672_p0 }
  0x35   : > { %1682 = shalt.err (!%p1679_p7)
}
  0x36   : > { %1485 = dma.hbm_to_vmem [thread:$0]  (!%p1883_p11), %s2185_s5, 2048, %s253_s16, [#allocation9], %s2189_s18, %s2189_s18, %s2190_s19  }
  0x37   : > { %s1923_s14 = sadd.s32 1, %s1783_s27   ;;  %s32_s15 = sadd.s32 1, %s1779_s26 }
  0x38   : > { %s29_s12 = ssub.s32 %s1783_s27, %s1923_s14  ;;  %p39_p12 = scmp.ne.s32.totalorder %s1779_s26, %s1775_s25 }
  0x39   : > { %p30_p1 = scmp.eq.s32.totalorder %s29_s12, 0  ;;  %p40_p9 = scmp.eq.s32.totalorder %s1783_s27, 0 }
  0x3a   : > { %p1497_p13 = scmp.lt.s32.totalorder %s1783_s27, 2  ;;  %p1937_p3 = por %p195_p2, %p39_p12 }
  0x3b   : > { %s1933_s17 = scalar_select %p30_p1, %s1779_s26, %s32_s15  }
  0x3c   : > { %p41_p0 = por %p40_p9, %p39_p12  ;;  %s269_s21 = sand.u32 1, %s1779_s26  }
  0x3d   : > { %s2200_s20 = scalar_select %p1937_p3, 1, 0 }
  0x3e   : > { %s1162_s22 = sshll.u32 %s1783_s27, 11  ;;  %s1129_s16 = sshll.u32 %s269_s21, 7 }
  0x3f   : > { %s1946_s10 = scalar_lea.hbm %s2180_s0, %s1162_s22  ;;  %s273_s11 = scalar_lea.vmem [#allocation2], %s1129_s16 }
  0x40   : > { %s280_s13 = sshll.u32 %s273_s11, 4  ;;  %p1948_p11 = pnand %p1497_p13, %p41_p0  ;;  %s1952_s13 = int_to_ptr.vmem [resolvable:$true] %s280_s13 }
  0x41   : > { %s1954_s15 = scalar_lea.sflag [#allocation3], %s269_s21  ;;  %s1683_s18 = scalar_lea.hbm %s1946_s10, 2048 }
  0x42   : > { %p1684_p2 = scmp.ne.s32.totalorder %s1946_s10, %s1683_s18  ;;  %p1685_p5 = pneg %p1948_p11 }
  0x43   : > { %s1688_s16 = scalar_lea.hbm %s2180_s0, 4096  ;;  %p1689_p1 = scmp.lt.s32.totalorder %s1946_s10, %s2180_s0 }
  0x44   : > { %p1686_p10 = pnand %p1685_p5, %p1684_p2  ;;  %p1690_p12 = scmp.lt.s32.totalorder %s1688_s16, %s1683_s18 }
  0x46   : > { %p1687_p7 = pneg %p1686_p10  ;;  %p1691_p9 = por %p1690_p12, %p1689_p1 }
  0x48   : > { %p1692_p13 = pnand %p1691_p9, %p1687_p7 }
  0x4a   : > { %1695 = shalt.err (!%p1692_p13)
}
  0x4b   : > { %s1696_s21 = scalar_lea.vmem %s1952_s13, 2048  ;;  %s1790_s19 = smov [#allocation2]  }
  0x4c   : > { %p1697_p0 = scmp.ne.s32.totalorder %s1952_s13, %s1696_s21  ;;  %s1701_s1 = sshll.u32 %s1790_s19, 4  ;;  %s1702_s1 = int_to_ptr.vmem [resolvable:$false] %s1701_s1 }
  0x4d   : > { %s1703_s22 = scalar_lea.vmem %s1702_s1, 4096  ;;  %p1704_p10 = scmp.lt.s32.totalorder %s1952_s13, %s1702_s1 }
  0x4e   : > { %p1699_p6 = pnand %p1697_p0, %p1685_p5  ;;  %p1705_p3 = scmp.lt.s32.totalorder %s1703_s22, %s1696_s21 }
  0x50   : > { %p1700_p2 = pneg %p1699_p6  ;;  %p1706_p4 = por %p1705_p3, %p1704_p10 }
  0x52   : > { %p1707_p8 = pnand %p1706_p4, %p1700_p2 }
  0x54   : > { %1710 = shalt.err (!%p1707_p8)
}
  0x55   : > { %s2202_s18 = smov 8   ;;  %s2203_s23 = smov 128  }
  0x56   : > { %1489 = dma.hbm_to_vmem [thread:$0]  (!%p1948_p11), %s1946_s10, 2048, %s1952_s13, %s1954_s15, %s2203_s23, %s2203_s23, %s2202_s18  }
  0x57   : > { %p2204_p6 = scmp.ne.s32.totalorder %s2197_s9, 0 }
  0x58   : > { %s1981_s19 = sand.u32 (!%p2204_p6), 1, %s1775_s25   ;;  %p2205_p4 = scmp.ne.s32.totalorder (!%p2204_p6), %s2195_s30, 0 }
  0x59   : > { %292 = sbr.rel (%p2204_p6) target bundleno = 807 (0x327), region = 48  ;;  %s1133_s1 = sshll.u32 (!%p2204_p6), %s1981_s19, 7 }
  0x5a   : > { %s295_s16 = scalar_lea.sflag (!%p2204_p6), [#allocation3], %s1981_s19  ;;  %s1987_s12 = scalar_lea.vmem (!%p2204_p6), [#allocation2], %s1133_s1 }
  0x5e   : > { %1754 = dma.done.wait (%p2205_p4), %s295_s16, 2048  }
  0x5f   : > { %1756 = vsyncadd (%p2205_p4), %s295_s16, 4294965248  ;;  %p2206_p8 = scmp.eq.s32.totalorder %s1855_s28, 0 }
  0x61   : > { %1758 = dma.done.wait (%p2206_p8), [#allocation6], 4096   ;;  %p2207_p3 = pmov %p2206_p8 }
  0x63   : > { %1760 = vsyncadd (%p2207_p3), [#allocation6], 4294963200  ;;  %p2208_p11 = pmov %p2207_p3 }
  0x64   : > { %p2209_p5 = pmov %p2207_p3 }
  0x65   : > { %1762 = dma.done.wait (%p2208_p11), [#allocation9], 2048  }
  0x66   : > { %1764 = vsyncadd (%p2209_p5), [#allocation9], 4294965248  ;;  %v374_v0 = vld [vmem:[#allocation5 + $0x78] sm:$0xff]  ;;  %v373_v1 = vld [vmem:[#allocation5 + $0x70] sm:$0xff]  ;;  %s2112_s11 = scalar_lea.vmem [#allocation10], %s1133_s1  ;;  %s1163_s21 = sshll.u32 %s1855_s28, 11 }
  0x67   : > { %1260 = vmatprep.subr.mxu0 %v374_v0  ;;  %v372_v2 = vld [vmem:[#allocation5 + $0x68] sm:$0xff]  ;;  %v371_v3 = vld [vmem:[#allocation5 + $0x60] sm:$0xff]  ;;  %v370_v5 = vld [vmem:[#allocation5 + $0x58] sm:$0xff]  ;;  %s1021_s22 = sshll.u32 %s2112_s11, 4  ;;  %s2133_s1 = scalar_lea.hbm %s2187_s7, %s1163_s21  ;;  %s2135_s22 = int_to_ptr.vmem [resolvable:$true] %s1021_s22 }
  0x68   : > { %1261 = vmatpush3.msra.mxu0 %v374_v0  ;;  %v343_v4 = vld [vmem:[%s1987_s12] sm:$0xff]  ;;  %v369_v6 = vld [vmem:[#allocation5 + $0x50] sm:$0xff]  ;;  %v368_v7 = vld [vmem:[#allocation5 + $0x48] sm:$0xff]  ;;  %s1008_s16 = scalar_lea.sflag [#allocation4], %s1981_s19  ;;  %p2210_p1 = scmp.ne.s32.totalorder %s2200_s20, 0 }
  0x69   : > { %1262 = vmatprep.subr.mxu0 %v373_v1  ;;  %1292 = vmatprep.mubr.f32.mxu0 %v343_v4  ;;  %v558_v8 = vld [vmem:[#allocation7 + $0x78] sm:$0xff]  ;;  %v557_v9 = vld [vmem:[#allocation7 + $0x70] sm:$0xff]  ;;  %v367_v10 = vld [vmem:[#allocation5 + $0x40] sm:$0xff]  ;;  %s1791_s28 = smov [#allocation10]  }
  0x6a   : > { %1263 = vmatpush3.msra.mxu0 %v373_v1  ;;  %1316 = vmatprep.subr.mxu1 %v558_v8  ;;  %v556_v11 = vld [vmem:[#allocation7 + $0x68] sm:$0xff]  ;;  %v366_v12 = vld [vmem:[#allocation5 + $0x38] sm:$0xff]  ;;  %v555_v13 = vld [vmem:[#allocation7 + $0x60] sm:$0xff]  ;;  %s1715_s30 = sshll.u32 %s1791_s28, 4  ;;  %s1716_s30 = int_to_ptr.vmem [resolvable:$false] %s1715_s30 }
  0x6b   : > { %1264 = vmatprep.subr.mxu0 %v372_v2  ;;  %1317 = vmatpush3.msra.mxu1 %v558_v8  ;;  %v365_v14 = vld [vmem:[#allocation5 + $0x30] sm:$0xff]  ;;  %v554_v15 = vld [vmem:[#allocation7 + $0x58] sm:$0xff]  ;;  %v364_v16 = vld [vmem:[#allocation5 + $0x28] sm:$0xff]  ;;  %s1717_s9 = scalar_lea.vmem %s1716_s30, 4096  ;;  %p1718_p13 = scmp.lt.s32.totalorder %s2135_s22, %s1716_s30 }
  0x6c   : > { %1265 = vmatpush3.msra.mxu0 %v372_v2  ;;  %1318 = vmatprep.subr.mxu1 %v557_v9  ;;  %v553_v17 = vld [vmem:[#allocation7 + $0x50] sm:$0xff]  ;;  %v363_v18 = vld [vmem:[#allocation5 + $0x20] sm:$0xff]  ;;  %v552_v19 = vld [vmem:[#allocation7 + $0x48] sm:$0xff] }
  0x6d   : > { %1266 = vmatprep.subr.mxu0 %v371_v3  ;;  %1319 = vmatpush3.msra.mxu1 %v557_v9  ;;  %v362_v20 = vld [vmem:[#allocation5 + $0x18] sm:$0xff]  ;;  %v551_v21 = vld [vmem:[#allocation7 + $0x40] sm:$0xff]  ;;  %v361_v22 = vld [vmem:[#allocation5 + $0x10] sm:$0xff] }
  0x6e   : > { %1267 = vmatpush3.msra.mxu0 %v371_v3  ;;  %1320 = vmatprep.subr.mxu1 %v556_v11  ;;  %v550_v23 = vld [vmem:[#allocation7 + $0x38] sm:$0xff]  ;;  %v360_v24 = vld [vmem:[#allocation5 + $0x8] sm:$0xff]  ;;  %v549_v25 = vld [vmem:[#allocation7 + $0x30] sm:$0xff] }
  0x6f   : > { %1268 = vmatprep.subr.mxu0 %v370_v5  ;;  %1321 = vmatpush3.msra.mxu1 %v556_v11  ;;  %v359_v26 = vld [vmem:[#allocation5] sm:$0xff]  ;;  %v548_v27 = vld [vmem:[#allocation7 + $0x28] sm:$0xff]  ;;  %v345_v30 = vld [vmem:[%s1987_s12 + $0x10] sm:$0xff] }
  0x70   : > { %1269 = vmatpush3.msra.mxu0 %v370_v5  ;;  %1322 = vmatprep.subr.mxu1 %v555_v13  ;;  %v344_v28 = vld [vmem:[%s1987_s12 + $0x8] sm:$0xff]  ;;  %v547_v29 = vld [vmem:[#allocation7 + $0x20] sm:$0xff]  ;;  %v346_v31 = vld [vmem:[%s1987_s12 + $0x18] sm:$0xff] }
  0x71   : > { %1270 = vmatprep.subr.mxu0 %v369_v6  ;;  %1323 = vmatpush3.msra.mxu1 %v555_v13  ;;  %v347_v32 = vld [vmem:[%s1987_s12 + $0x20] sm:$0xff]  ;;  %v348_v33 = vld [vmem:[%s1987_s12 + $0x28] sm:$0xff]  ;;  %v349_v34 = vld [vmem:[%s1987_s12 + $0x30] sm:$0xff] }
  0x72   : > { %1271 = vmatpush3.msra.mxu0 %v369_v6  ;;  %1324 = vmatprep.subr.mxu1 %v554_v15  ;;  %v350_v35 = vld [vmem:[%s1987_s12 + $0x38] sm:$0xff]  ;;  %v351_v36 = vld [vmem:[%s1987_s12 + $0x40] sm:$0xff]  ;;  %v352_v37 = vld [vmem:[%s1987_s12 + $0x48] sm:$0xff] }
  0x73   : > { %1272 = vmatprep.subr.mxu0 %v368_v7  ;;  %1325 = vmatpush3.msra.mxu1 %v554_v15  ;;  %v353_v38 = vld [vmem:[%s1987_s12 + $0x50] sm:$0xff]  ;;  %v354_v39 = vld [vmem:[%s1987_s12 + $0x58] sm:$0xff]  ;;  %v355_v40 = vld [vmem:[%s1987_s12 + $0x60] sm:$0xff] }
  0x74   : > { %1273 = vmatpush3.msra.mxu0 %v368_v7  ;;  %1326 = vmatprep.subr.mxu1 %v553_v17  ;;  %v356_v41 = vld [vmem:[%s1987_s12 + $0x68] sm:$0xff]  ;;  %v357_v42 = vld [vmem:[%s1987_s12 + $0x70] sm:$0xff]  ;;  %v358_v43 = vld [vmem:[%s1987_s12 + $0x78] sm:$0xff]  ;;  %s1711_s12 = scalar_lea.vmem %s2135_s22, 2048 }
  0x75   : > { %1274 = vmatprep.subr.mxu0 %v367_v10  ;;  %1327 = vmatpush3.msra.mxu1 %v553_v17  ;;  %v546_v44 = vld [vmem:[#allocation7 + $0x18] sm:$0xff]  ;;  %v545_v45 = vld [vmem:[#allocation7 + $0x10] sm:$0xff]  ;;  %v544_v46 = vld [vmem:[#allocation7 + $0x8] sm:$0xff]  ;;  %p1712_p7 = scmp.ne.s32.totalorder %s2135_s22, %s1711_s12  ;;  %p1719_p0 = scmp.lt.s32.totalorder %s1717_s9, %s1711_s12 }
  0x76   : > { %1275 = vmatpush3.msra.mxu0 %v367_v10  ;;  %1328 = vmatprep.subr.mxu1 %v552_v19  ;;  %v543_v47 = vld [vmem:[#allocation7] sm:$0xff]  ;;  %v742_v48 = vld [vmem:[#allocation8 + $0x78] sm:$0xff]  ;;  %v741_v49 = vld [vmem:[#allocation8 + $0x70] sm:$0xff] }
  0x77   : > { %1276 = vmatprep.subr.mxu0 %v366_v12  ;;  %1329 = vmatpush3.msra.mxu1 %v552_v19  ;;  %v740_v50 = vld [vmem:[#allocation8 + $0x68] sm:$0xff]  ;;  %v739_v51 = vld [vmem:[#allocation8 + $0x60] sm:$0xff]  ;;  %v2017_v52 = vld [vmem:[#allocation8 + $0x58] sm:$0xff]  ;;  %p1713_p12 = pnand %p1712_p7, %p2210_p1  ;;  %p1720_p2 = por %p1719_p0, %p1718_p13 }
  0x78   : > { %1277 = vmatpush3.msra.mxu0 %v366_v12  ;;  %1330 = vmatprep.subr.mxu1 %v551_v21  ;;  %v2019_v53 = vld [vmem:[#allocation8 + $0x50] sm:$0xff]  ;;  %v2023_v54 = vld [vmem:[#allocation8 + $0x48] sm:$0xff]  ;;  %v2027_v55 = vld [vmem:[#allocation8 + $0x40] sm:$0xff] }
  0x79   : > { %1278 = vmatprep.subr.mxu0 %v365_v14  ;;  %1331 = vmatpush3.msra.mxu1 %v551_v21  ;;  %v2031_v56 = vld [vmem:[#allocation8 + $0x38] sm:$0xff]  ;;  %v2035_v57 = vld [vmem:[#allocation8 + $0x30] sm:$0xff]  ;;  %v2039_v58 = vld [vmem:[#allocation8 + $0x28] sm:$0xff]  ;;  %p1714_p9 = pneg %p1713_p12 }
  0x7a   : > { %1279 = vmatpush3.msra.mxu0 %v365_v14  ;;  %1332 = vmatprep.subr.mxu1 %v550_v23  ;;  %v2043_v59 = vld [vmem:[#allocation8 + $0x20] sm:$0xff] }
  0x7b   : > { %1280 = vmatprep.subr.mxu0 %v364_v16  ;;  %1333 = vmatpush3.msra.mxu1 %v550_v23  ;;  %v2052_v60 = vld [vmem:[%s2182_s2] ss:$0 sm:$0xff]  ;;  %p1721_p10 = pnand %p1720_p2, %p1714_p9 }
  0x7c   : > { %1281 = vmatpush3.msra.mxu0 %v364_v16  ;;  %1334 = vmatprep.subr.mxu1 %v549_v25 }
  0x7d   : > { %1282 = vmatprep.subr.mxu0 %v363_v18  ;;  %1335 = vmatpush3.msra.mxu1 %v549_v25 }
  0x7e   : > { %1283 = vmatpush3.msra.mxu0 %v363_v18  ;;  %1336 = vmatprep.subr.mxu1 %v548_v27 }
  0x7f   : > { %1284 = vmatprep.subr.mxu0 %v362_v20  ;;  %1337 = vmatpush3.msra.mxu1 %v548_v27 }
  0x80   : > { %1285 = vmatpush3.msra.mxu0 %v362_v20  ;;  %1338 = vmatprep.subr.mxu1 %v547_v29 }
  0x81   : > { %1286 = vmatprep.subr.mxu0 %v361_v22  ;;  %1339 = vmatpush3.msra.mxu1 %v547_v29 }
  0x82   : > { %1287 = vmatpush3.msra.mxu0 %v361_v22  ;;  %1340 = vmatprep.subr.mxu1 %v546_v44 }
  0x83   : > { %1288 = vmatprep.subr.mxu0 %v360_v24  ;;  %1341 = vmatpush3.msra.mxu1 %v546_v44 }
  0x84   : > { %1289 = vmatpush3.msra.mxu0 %v360_v24  ;;  %1342 = vmatprep.subr.mxu1 %v545_v45 }
  0x85   : > { %1290 = vmatprep.subr.mxu0 %v359_v26  ;;  %1343 = vmatpush3.msra.mxu1 %v545_v45  ;;  %v730_v45 = vld [vmem:[#allocation8 + $0x18] sm:$0xff] }
  0x86   : > { %1291 = vmatpush3.msra.mxu0 %v359_v26  ;;  %1344 = vmatprep.subr.mxu1 %v544_v46 }
  0x87   : > { %1293 = vmatmul.mubr.f32.vlgmr.msra.gmra.mxu0 %v344_v28  ;;  %1345 = vmatpush3.msra.mxu1 %v544_v46  ;;  %v729_v46 = vld [vmem:[#allocation8 + $0x10] sm:$0xff] }
  0x88   : > { %1295 = vmatprep.mubr.f32.mxu0 %v345_v30  ;;  %1346 = vmatprep.subr.mxu1 %v543_v47 }
  0x89   : > { %1347 = vmatpush3.msra.mxu1 %v543_v47  ;;  %1372 = vmatprep.subr.mxu0 %v742_v48  ;;  %v728_v47 = vld [vmem:[#allocation8 + $0x8] sm:$0xff] }
  0x8a   : > { %1428 = vmatprep.subr.mxu1 %v742_v48  ;;  %1373 = vmatpush3.msra.mxu0 %v742_v48 }
  0x8b   : > { %1296 = vmatmul.mubr.f32.gmra.mxu0 %v346_v31  ;;  %1374 = vmatprep.subr.mxu0 %v741_v49 }
  0x8c   : > { %1298 = vmatprep.mubr.f32.mxu0 %v347_v32  ;;  %1375 = vmatpush3.msra.mxu0 %v741_v49 }
  0x8d   : > { %1376 = vmatprep.subr.mxu0 %v740_v50 }
  0x8e   : > { %1377 = vmatpush3.msra.mxu0 %v740_v50 }
  0x8f   : > { %1299 = vmatmul.mubr.f32.gmra.mxu0 %v348_v33  ;;  %1378 = vmatprep.subr.mxu0 %v739_v51 }
  0x90   : > { %1301 = vmatprep.mubr.f32.mxu0 %v349_v34  ;;  %1379 = vmatpush3.msra.mxu0 %v739_v51 }
  0x91   : > { %1380 = vmatprep.subr.mxu0 %v2017_v52 }
  0x92   : > { %1381 = vmatpush3.msra.mxu0 %v2017_v52 }
  0x93   : > { %1302 = vmatmul.mubr.f32.gmra.mxu0 %v350_v35  ;;  %1382 = vmatprep.subr.mxu0 %v2019_v53 }
  0x94   : > { %1304 = vmatprep.mubr.f32.mxu0 %v351_v36  ;;  %1383 = vmatpush3.msra.mxu0 %v2019_v53 }
  0x95   : > { %1384 = vmatprep.subr.mxu0 %v2023_v54 }
  0x96   : > { %1385 = vmatpush3.msra.mxu0 %v2023_v54 }
  0x97   : > { %1305 = vmatmul.mubr.f32.gmra.mxu0 %v352_v37  ;;  %1386 = vmatprep.subr.mxu0 %v2027_v55 }
  0x98   : > { %1307 = vmatprep.mubr.f32.mxu0 %v353_v38  ;;  %1387 = vmatpush3.msra.mxu0 %v2027_v55 }
  0x99   : > { %1388 = vmatprep.subr.mxu0 %v2031_v56 }
  0x9a   : > { %1389 = vmatpush3.msra.mxu0 %v2031_v56 }
  0x9b   : > { %1308 = vmatmul.mubr.f32.gmra.mxu0 %v354_v39  ;;  %1390 = vmatprep.subr.mxu0 %v2035_v57 }
  0x9c   : > { %1310 = vmatprep.mubr.f32.mxu0 %v355_v40  ;;  %1391 = vmatpush3.msra.mxu0 %v2035_v57 }
  0x9d   : > { %1392 = vmatprep.subr.mxu0 %v2039_v58 }
  0x9e   : > { %1393 = vmatpush3.msra.mxu0 %v2039_v58 }
  0x9f   : > { %1311 = vmatmul.mubr.f32.gmra.mxu0 %v356_v41  ;;  %1394 = vmatprep.subr.mxu0 %v2043_v59 }
  0xa0   : > { %1313 = vmatprep.mubr.f32.mxu0 %v357_v42  ;;  %1395 = vmatpush3.msra.mxu0 %v2043_v59 }
  0xa1   : > { %1396 = vmatprep.subr.mxu0 %v730_v45 }
  0xa2   : > { %1397 = vmatpush3.msra.mxu0 %v730_v45 }
  0xa3   : > { %1314 = vmatmul.mubr.f32.gmra.mxu0 %v358_v43  ;;  %1398 = vmatprep.subr.mxu0 %v729_v46 }
  0xa4   : > { %1399 = vmatpush3.msra.mxu0 %v729_v46 }
  0xa5   : > { %1400 = vmatprep.subr.mxu0 %v728_v47 }
  0xa6   : > { %1401 = vmatpush3.msra.mxu0 %v728_v47 }
 0x147   : > { %v1294_v61 = vpop.f32.mrf.mxu0 }
 0x148   : > { %v454_v62 = vadd.f32 %v1294_v61, %v2052_v60 }
 0x149   : > { %v448_v63 = vpop.f32.mrf.mxu0 }
 0x14a   : > { %v449_v0 = vadd.f32 %v2052_v60, %v448_v63  ;;  %v528_v3 = vmax.f32 %v454_v62, 0.0 }
 0x14b   : > { %v1297_v1 = vpop.f32.mrf.mxu0 }
 0x14c   : > { %v527_v2 = vmax.f32 %v449_v0, 0.0  ;;  %v464_v4 = vadd.f32 %v1297_v1, %v2052_v60 }
 0x14d   : > { %v458_v5 = vpop.f32.mrf.mxu0 }
 0x14e   : > { %v459_v6 = vadd.f32 %v2052_v60, %v458_v5  ;;  %1348 = vmatprep.mubr.f32.mxu1 %v527_v2  ;;  %v530_v9 = vmax.f32 %v464_v4, 0.0 }
 0x14f   : > { %v1300_v7 = vpop.f32.mrf.mxu0  ;;  %1349 = vmatmul.mubr.f32.vlgmr.msra.gmra.mxu1 %v528_v3 }
 0x150   : > { %v529_v8 = vmax.f32 %v459_v6, 0.0  ;;  %1444 = vmatpush3.msra.mxu1 %v742_v48  ;;  %v474_v10 = vadd.f32 %v1300_v7, %v2052_v60  ;;  %v727_v48 = vld [vmem:[#allocation8] sm:$0xff] }
 0x151   : > { %v468_v11 = vpop.f32.mrf.mxu0  ;;  %1429 = vmatprep.subr.mxu1 %v741_v49  ;;  %1402 = vmatprep.subr.mxu0 %v727_v48 }
 0x152   : > { %v469_v12 = vadd.f32 %v2052_v60, %v468_v11  ;;  %1351 = vmatprep.mubr.f32.mxu1 %v529_v8  ;;  %1445 = vmatpush3.msra.mxu1 %v741_v49  ;;  %v532_v15 = vmax.f32 %v474_v10, 0.0  ;;  %v1139_v49 = vld [vmem:[%s2184_s4] ss:$0 sm:$0xff] }
 0x153   : > { %v1303_v13 = vpop.f32.mrf.mxu0  ;;  %1352 = vmatmul.mubr.f32.gmra.mxu1 %v530_v9  ;;  %1430 = vmatprep.subr.mxu1 %v740_v50 }
 0x154   : > { %v531_v14 = vmax.f32 %v469_v12, 0.0  ;;  %1446 = vmatpush3.msra.mxu1 %v740_v50  ;;  %v484_v16 = vadd.f32 %v1303_v13, %v2052_v60  ;;  %1403 = vmatpush3.msra.mxu0 %v727_v48 }
 0x155   : > { %v478_v17 = vpop.f32.mrf.mxu0  ;;  %1431 = vmatprep.subr.mxu1 %v739_v51 }
 0x156   : > { %v479_v18 = vadd.f32 %v2052_v60, %v478_v17  ;;  %1354 = vmatprep.mubr.f32.mxu1 %v531_v14  ;;  %1447 = vmatpush3.msra.mxu1 %v739_v51  ;;  %v534_v21 = vmax.f32 %v484_v16, 0.0 }
 0x157   : > { %v1306_v19 = vpop.f32.mrf.mxu0  ;;  %1355 = vmatmul.mubr.f32.gmra.mxu1 %v532_v15  ;;  %1432 = vmatprep.subr.mxu1 %v2017_v52 }
 0x158   : > { %v533_v20 = vmax.f32 %v479_v18, 0.0  ;;  %1448 = vmatpush3.msra.mxu1 %v2017_v52  ;;  %v494_v22 = vadd.f32 %v1306_v19, %v2052_v60 }
 0x159   : > { %v488_v23 = vpop.f32.mrf.mxu0  ;;  %1433 = vmatprep.subr.mxu1 %v2019_v53 }
 0x15a   : > { %v489_v24 = vadd.f32 %v2052_v60, %v488_v23  ;;  %1357 = vmatprep.mubr.f32.mxu1 %v533_v20  ;;  %1449 = vmatpush3.msra.mxu1 %v2019_v53  ;;  %v536_v27 = vmax.f32 %v494_v22, 0.0 }
 0x15b   : > { %v1309_v25 = vpop.f32.mrf.mxu0  ;;  %1358 = vmatmul.mubr.f32.gmra.mxu1 %v534_v21  ;;  %1434 = vmatprep.subr.mxu1 %v2023_v54 }
 0x15c   : > { %v535_v26 = vmax.f32 %v489_v24, 0.0  ;;  %1450 = vmatpush3.msra.mxu1 %v2023_v54  ;;  %v504_v28 = vadd.f32 %v1309_v25, %v2052_v60 }
 0x15d   : > { %v498_v29 = vpop.f32.mrf.mxu0  ;;  %1435 = vmatprep.subr.mxu1 %v2027_v55 }
 0x15e   : > { %v499_v30 = vadd.f32 %v2052_v60, %v498_v29  ;;  %1360 = vmatprep.mubr.f32.mxu1 %v535_v26  ;;  %1451 = vmatpush3.msra.mxu1 %v2027_v55  ;;  %v538_v33 = vmax.f32 %v504_v28, 0.0 }
 0x15f   : > { %v1312_v31 = vpop.f32.mrf.mxu0  ;;  %1361 = vmatmul.mubr.f32.gmra.mxu1 %v536_v27  ;;  %1436 = vmatprep.subr.mxu1 %v2031_v56 }
 0x160   : > { %v537_v32 = vmax.f32 %v499_v30, 0.0  ;;  %1452 = vmatpush3.msra.mxu1 %v2031_v56  ;;  %v514_v34 = vadd.f32 %v1312_v31, %v2052_v60 }
 0x161   : > { %v508_v35 = vpop.f32.mrf.mxu0  ;;  %1437 = vmatprep.subr.mxu1 %v2035_v57 }
 0x162   : > { %v509_v36 = vadd.f32 %v2052_v60, %v508_v35  ;;  %1363 = vmatprep.mubr.f32.mxu1 %v537_v32  ;;  %1453 = vmatpush3.msra.mxu1 %v2035_v57  ;;  %v540_v39 = vmax.f32 %v514_v34, 0.0  ;;  %v2092_v34 = vld [vmem:[%s2186_s6] ss:$0 sm:$0xff] }
 0x163   : > { %v1315_v37 = vpop.f32.mrf.mxu0  ;;  %1364 = vmatmul.mubr.f32.gmra.mxu1 %v538_v33  ;;  %1438 = vmatprep.subr.mxu1 %v2039_v58 }
 0x164   : > { %v539_v38 = vmax.f32 %v509_v36, 0.0  ;;  %1454 = vmatpush3.msra.mxu1 %v2039_v58  ;;  %v524_v40 = vadd.f32 %v1315_v37, %v2052_v60 }
 0x165   : > { %v518_v41 = vpop.f32.mrf.mxu0  ;;  %1439 = vmatprep.subr.mxu1 %v2043_v59 }
 0x166   : > { %v519_v42 = vadd.f32 %v2052_v60, %v518_v41  ;;  %1366 = vmatprep.mubr.f32.mxu1 %v539_v38  ;;  %1455 = vmatpush3.msra.mxu1 %v2043_v59  ;;  %v542_v44 = vmax.f32 %v524_v40, 0.0 }
 0x167   : > { %1367 = vmatmul.mubr.f32.gmra.mxu1 %v540_v39  ;;  %1440 = vmatprep.subr.mxu1 %v730_v45 }
 0x168   : > { %v541_v43 = vmax.f32 %v519_v42, 0.0  ;;  %1456 = vmatpush3.msra.mxu1 %v730_v45 }
 0x169   : > { %1441 = vmatprep.subr.mxu1 %v729_v46 }
 0x16a   : > { %1369 = vmatprep.mubr.f32.mxu1 %v541_v43  ;;  %1457 = vmatpush3.msra.mxu1 %v729_v46 }
 0x16b   : > { %1370 = vmatmul.mubr.f32.gmra.mxu1 %v542_v44  ;;  %1442 = vmatprep.subr.mxu1 %v728_v47 }
 0x16c   : > { %1458 = vmatpush3.msra.mxu1 %v728_v47 }
 0x16d   : > { %1443 = vmatprep.subr.mxu1 %v727_v48 }
 0x16e   : > { %1459 = vmatpush3.msra.mxu1 %v727_v48 }
 0x20f   : > { %v1350_v50 = vpop.f32.mrf.mxu1 }
 0x210   : > { %v638_v51 = vadd.f32 %v1350_v50, %v1139_v49 }
 0x211   : > { %v632_v52 = vpop.f32.mrf.mxu1 }
 0x212   : > { %v633_v53 = vadd.f32 %v1139_v49, %v632_v52  ;;  %v712_v56 = vmax.f32 %v638_v51, 0.0 }
 0x213   : > { %v1353_v54 = vpop.f32.mrf.mxu1 }
 0x214   : > { %v711_v55 = vmax.f32 %v633_v53, 0.0  ;;  %v648_v57 = vadd.f32 %v1353_v54, %v1139_v49 }
 0x215   : > { %v642_v58 = vpop.f32.mrf.mxu1 }
 0x216   : > { %v643_v59 = vadd.f32 %v1139_v49, %v642_v58  ;;  %1404 = vmatprep.mubr.f32.mxu0 %v711_v55  ;;  %v714_v62 = vmax.f32 %v648_v57, 0.0 }
 0x217   : > { %v1356_v60 = vpop.f32.mrf.mxu1  ;;  %1405 = vmatmul.mubr.f32.vlgmr.msra.gmra.mxu0 %v712_v56 }
 0x218   : > { %v713_v61 = vmax.f32 %v643_v59, 0.0  ;;  %v658_v63 = vadd.f32 %v1356_v60, %v1139_v49 }
 0x219   : > { %v652_v0 = vpop.f32.mrf.mxu1 }
 0x21a   : > { %v653_v1 = vadd.f32 %v1139_v49, %v652_v0  ;;  %1407 = vmatprep.mubr.f32.mxu0 %v713_v61  ;;  %v716_v4 = vmax.f32 %v658_v63, 0.0 }
 0x21b   : > { %v1359_v2 = vpop.f32.mrf.mxu1  ;;  %1408 = vmatmul.mubr.f32.gmra.mxu0 %v714_v62 }
 0x21c   : > { %v715_v3 = vmax.f32 %v653_v1, 0.0  ;;  %v668_v5 = vadd.f32 %v1359_v2, %v1139_v49 }
 0x21d   : > { %v662_v6 = vpop.f32.mrf.mxu1 }
 0x21e   : > { %v663_v7 = vadd.f32 %v1139_v49, %v662_v6  ;;  %1410 = vmatprep.mubr.f32.mxu0 %v715_v3  ;;  %v718_v10 = vmax.f32 %v668_v5, 0.0 }
 0x21f   : > { %v1362_v8 = vpop.f32.mrf.mxu1  ;;  %1411 = vmatmul.mubr.f32.gmra.mxu0 %v716_v4 }
 0x220   : > { %v717_v9 = vmax.f32 %v663_v7, 0.0  ;;  %v678_v11 = vadd.f32 %v1362_v8, %v1139_v49 }
 0x221   : > { %v672_v12 = vpop.f32.mrf.mxu1 }
 0x222   : > { %v673_v13 = vadd.f32 %v1139_v49, %v672_v12  ;;  %1413 = vmatprep.mubr.f32.mxu0 %v717_v9  ;;  %v720_v16 = vmax.f32 %v678_v11, 0.0 }
 0x223   : > { %v1365_v14 = vpop.f32.mrf.mxu1  ;;  %1414 = vmatmul.mubr.f32.gmra.mxu0 %v718_v10 }
 0x224   : > { %v719_v15 = vmax.f32 %v673_v13, 0.0  ;;  %v688_v17 = vadd.f32 %v1365_v14, %v1139_v49 }
 0x225   : > { %v682_v18 = vpop.f32.mrf.mxu1 }
 0x226   : > { %v683_v19 = vadd.f32 %v1139_v49, %v682_v18  ;;  %1416 = vmatprep.mubr.f32.mxu1 %v719_v15  ;;  %v722_v22 = vmax.f32 %v688_v17, 0.0 }
 0x227   : > { %v1368_v20 = vpop.f32.mrf.mxu1  ;;  %1417 = vmatmul.mubr.f32.vlgmr.msra.gmra.mxu1 %v720_v16 }
 0x228   : > { %v721_v21 = vmax.f32 %v683_v19, 0.0  ;;  %v698_v23 = vadd.f32 %v1368_v20, %v1139_v49 }
 0x229   : > { %v692_v24 = vpop.f32.mrf.mxu1 }
 0x22a   : > { %v693_v25 = vadd.f32 %v1139_v49, %v692_v24  ;;  %1419 = vmatprep.mubr.f32.mxu1 %v721_v21  ;;  %v724_v28 = vmax.f32 %v698_v23, 0.0 }
 0x22b   : > { %v1371_v26 = vpop.f32.mrf.mxu1  ;;  %1420 = vmatmul.mubr.f32.gmra.mxu1 %v722_v22 }
 0x22c   : > { %v723_v27 = vmax.f32 %v693_v25, 0.0  ;;  %v708_v29 = vadd.f32 %v1371_v26, %v1139_v49 }
 0x22d   : > { %v702_v30 = vpop.f32.mrf.mxu1 }
 0x22e   : > { %v703_v31 = vadd.f32 %v1139_v49, %v702_v30  ;;  %1422 = vmatprep.mubr.f32.mxu1 %v723_v27  ;;  %v726_v33 = vmax.f32 %v708_v29, 0.0 }
 0x22f   : > { %1423 = vmatmul.mubr.f32.gmra.mxu1 %v724_v28 }
 0x230   : > { %v725_v32 = vmax.f32 %v703_v31, 0.0 }
 0x232   : > { %1425 = vmatprep.mubr.f32.mxu1 %v725_v32 }
 0x233   : > { %1426 = vmatmul.mubr.f32.gmra.mxu1 %v726_v33 }
 0x2d7   : > { %v1406_v35 = vpop.f32.mrf.mxu0 }
 0x2d8   : > { %v822_v36 = vadd.f32 %v1406_v35, %v2092_v34 }
 0x2d9   : > { %v816_v37 = vpop.f32.mrf.mxu0 }
 0x2da   : > { %v1142_v38 = vmul.f32 -1.442695, %v822_v36  ;;  %v817_v39 = vadd.f32 %v2092_v34, %v816_v37 }
 0x2db   : > { %v1409_v40 = vpop.f32.mrf.mxu0 }
 0x2dc   : > { %1541 = vpow2.f32 %v1142_v38  ;;  %v1141_v41 = vmul.f32 -1.442695, %v817_v39  ;;  %v832_v42 = vadd.f32 %v1409_v40, %v2092_v34 }
 0x2dd   : > { %v826_v43 = vpop.f32.mrf.mxu0 }
 0x2de   : > { %1543 = vpow2.f32 %v1141_v41  ;;  %v1144_v44 = vmul.f32 -1.442695, %v832_v42  ;;  %v827_v45 = vadd.f32 %v2092_v34, %v826_v43 }
 0x2df   : > { %v1412_v46 = vpop.f32.mrf.mxu0 }
 0x2e0   : > { %1545 = vpow2.f32 %v1144_v44  ;;  %v1143_v47 = vmul.f32 -1.442695, %v827_v45  ;;  %v842_v48 = vadd.f32 %v1412_v46, %v2092_v34 }
 0x2e1   : > { %v836_v49 = vpop.f32.mrf.mxu0 }
 0x2e2   : > { %1547 = vpow2.f32 %v1143_v47  ;;  %v1146_v50 = vmul.f32 -1.442695, %v842_v48  ;;  %v837_v51 = vadd.f32 %v2092_v34, %v836_v49 }
 0x2e3   : > { %v1415_v52 = vpop.f32.mrf.mxu0 }
 0x2e4   : > { %1549 = vpow2.f32 %v1146_v50  ;;  %v1145_v53 = vmul.f32 -1.442695, %v837_v51  ;;  %v852_v54 = vadd.f32 %v1415_v52, %v2092_v34 }
 0x2e5   : > { %v846_v55 = vpop.f32.mrf.mxu0 }
 0x2e6   : > { %1551 = vpow2.f32 %v1145_v53  ;;  %v1148_v56 = vmul.f32 -1.442695, %v852_v54  ;;  %v847_v57 = vadd.f32 %v2092_v34, %v846_v55 }
 0x2e7   : > { %v1418_v58 = vpop.f32.mrf.mxu1 }
 0x2e8   : > { %1553 = vpow2.f32 %v1148_v56  ;;  %v1147_v59 = vmul.f32 -1.442695, %v847_v57  ;;  %v862_v60 = vadd.f32 %v1418_v58, %v2092_v34 }
 0x2e9   : > { %v1542_v61 = vpop.eup %1541  ;;  %v856_v62 = vpop.f32.mrf.mxu1 }
 0x2ea   : > { %v944_v63 = vadd.f32 1.0, %v1542_v61  ;;  %1555 = vpow2.f32 %v1147_v59  ;;  %v1150_v0 = vmul.f32 -1.442695, %v862_v60  ;;  %v857_v1 = vadd.f32 %v2092_v34, %v856_v62 }
 0x2eb   : > { %v1544_v2 = vpop.eup %1543  ;;  %v1421_v3 = vpop.f32.mrf.mxu1 }
 0x2ec   : > { %1557 = vrcp.f32 %v944_v63  ;;  %v943_v4 = vadd.f32 1.0, %v1544_v2  ;;  %v1149_v5 = vmul.f32 -1.442695, %v857_v1  ;;  %v872_v6 = vadd.f32 %v1421_v3, %v2092_v34 }
 0x2ed   : > { %v1546_v7 = vpop.eup %1545  ;;  %1559 = vpow2.f32 %v1150_v0  ;;  %v866_v8 = vpop.f32.mrf.mxu1 }
 0x2ee   : > { %1561 = vrcp.f32 %v943_v4  ;;  %v946_v9 = vadd.f32 1.0, %v1546_v7  ;;  %v1152_v10 = vmul.f32 -1.442695, %v872_v6  ;;  %v867_v11 = vadd.f32 %v2092_v34, %v866_v8 }
 0x2ef   : > { %v1548_v12 = vpop.eup %1547  ;;  %1563 = vpow2.f32 %v1149_v5  ;;  %v1424_v13 = vpop.f32.mrf.mxu1 }
 0x2f0   : > { %1565 = vrcp.f32 %v946_v9  ;;  %v945_v14 = vadd.f32 1.0, %v1548_v12  ;;  %v1151_v15 = vmul.f32 -1.442695, %v867_v11  ;;  %v882_v16 = vadd.f32 %v1424_v13, %v2092_v34 }
 0x2f1   : > { %v1550_v17 = vpop.eup %1549  ;;  %1567 = vpow2.f32 %v1152_v10  ;;  %v876_v18 = vpop.f32.mrf.mxu1 }
 0x2f2   : > { %1569 = vrcp.f32 %v945_v14  ;;  %v948_v19 = vadd.f32 1.0, %v1550_v17  ;;  %v1154_v20 = vmul.f32 -1.442695, %v882_v16  ;;  %v877_v21 = vadd.f32 %v2092_v34, %v876_v18 }
 0x2f3   : > { %v1552_v22 = vpop.eup %1551  ;;  %1571 = vpow2.f32 %v1151_v15  ;;  %v1427_v23 = vpop.f32.mrf.mxu1 }
 0x2f4   : > { %1573 = vrcp.f32 %v948_v19  ;;  %v947_v24 = vadd.f32 1.0, %v1552_v22  ;;  %v1153_v25 = vmul.f32 -1.442695, %v877_v21  ;;  %v892_v26 = vadd.f32 %v1427_v23, %v2092_v34 }
 0x2f5   : > { %v1554_v27 = vpop.eup %1553  ;;  %1575 = vpow2.f32 %v1154_v20  ;;  %v886_v28 = vpop.f32.mrf.mxu1 }
 0x2f6   : > { %1577 = vrcp.f32 %v947_v24  ;;  %v950_v29 = vadd.f32 1.0, %v1554_v27  ;;  %v1156_v30 = vmul.f32 -1.442695, %v892_v26  ;;  %v887_v31 = vadd.f32 %v2092_v34, %v886_v28 }
 0x2f7   : > { %v1556_v32 = vpop.eup %1555  ;;  %1579 = vpow2.f32 %v1153_v25 }
 0x2f8   : > { %1581 = vrcp.f32 %v950_v29  ;;  %v949_v33 = vadd.f32 1.0, %v1556_v32  ;;  %v1155_v35 = vmul.f32 -1.442695, %v887_v31 }
 0x2f9   : > { %v1558_v36 = vpop.eup %1557  ;;  %1583 = vpow2.f32 %v1156_v30 }
 0x2fa   : > { %v1560_v37 = vpop.eup %1559  ;;  %992 = vst [vmem:[%s2112_s11 + $0x8] sm:$0xff] %v1558_v36  ;;  %1585 = vrcp.f32 %v949_v33 }
 0x2fb   : > { %v1562_v38 = vpop.eup %1561  ;;  %v952_v39 = vadd.f32 1.0, %v1560_v37  ;;  %1587 = vpow2.f32 %v1155_v35 }
 0x2fc   : > { %v1564_v34 = vpop.eup %1563  ;;  %991 = vst [vmem:[%s2112_s11] sm:$0xff] %v1562_v38 }
 0x2fd   : > { %v1566_v40 = vpop.eup %1565  ;;  %1589 = vrcp.f32 %v952_v39  ;;  %v951_v41 = vadd.f32 1.0, %v1564_v34 }
 0x2fe   : > { %v1568_v42 = vpop.eup %1567  ;;  %994 = vst [vmem:[%s2112_s11 + $0x18] sm:$0xff] %v1566_v40 }
 0x2ff   : > { %v1570_v43 = vpop.eup %1569  ;;  %1591 = vrcp.f32 %v951_v41  ;;  %v954_v44 = vadd.f32 1.0, %v1568_v42 }
 0x300   : > { %v1572_v45 = vpop.eup %1571  ;;  %993 = vst [vmem:[%s2112_s11 + $0x10] sm:$0xff] %v1570_v43 }
 0x301   : > { %v1574_v46 = vpop.eup %1573  ;;  %1593 = vrcp.f32 %v954_v44  ;;  %v953_v47 = vadd.f32 1.0, %v1572_v45 }
 0x302   : > { %v1576_v48 = vpop.eup %1575  ;;  %996 = vst [vmem:[%s2112_s11 + $0x28] sm:$0xff] %v1574_v46 }
 0x303   : > { %v1578_v49 = vpop.eup %1577  ;;  %1595 = vrcp.f32 %v953_v47  ;;  %v956_v50 = vadd.f32 1.0, %v1576_v48 }
 0x304   : > { %v1580_v51 = vpop.eup %1579  ;;  %995 = vst [vmem:[%s2112_s11 + $0x20] sm:$0xff] %v1578_v49 }
 0x305   : > { %v1582_v52 = vpop.eup %1581  ;;  %1597 = vrcp.f32 %v956_v50  ;;  %v955_v53 = vadd.f32 1.0, %v1580_v51 }
 0x306   : > { %v1584_v54 = vpop.eup %1583  ;;  %998 = vst [vmem:[%s2112_s11 + $0x38] sm:$0xff] %v1582_v52 }
 0x307   : > { %v1586_v55 = vpop.eup %1585  ;;  %1599 = vrcp.f32 %v955_v53  ;;  %v958_v56 = vadd.f32 1.0, %v1584_v54 }
 0x308   : > { %v1588_v57 = vpop.eup %1587  ;;  %997 = vst [vmem:[%s2112_s11 + $0x30] sm:$0xff] %v1586_v55 }
 0x309   : > { %1601 = vrcp.f32 %v958_v56  ;;  %v957_v58 = vadd.f32 1.0, %v1588_v57 }
 0x30a   : > { %v1590_v59 = vpop.eup %1589 }
 0x30b   : > { %1000 = vst [vmem:[%s2112_s11 + $0x48] sm:$0xff] %v1590_v59  ;;  %1603 = vrcp.f32 %v957_v58 }
 0x30c   : > { %v1592_v60 = vpop.eup %1591 }
 0x30d   : > { %999 = vst [vmem:[%s2112_s11 + $0x40] sm:$0xff] %v1592_v60 }
 0x30e   : > { %v1594_v61 = vpop.eup %1593 }
 0x30f   : > { %1002 = vst [vmem:[%s2112_s11 + $0x58] sm:$0xff] %v1594_v61 }
 0x310   : > { %v1596_v62 = vpop.eup %1595 }
 0x311   : > { %1001 = vst [vmem:[%s2112_s11 + $0x50] sm:$0xff] %v1596_v62 }
 0x312   : > { %v1598_v63 = vpop.eup %1597 }
 0x313   : > { %1004 = vst [vmem:[%s2112_s11 + $0x68] sm:$0xff] %v1598_v63 }
 0x314   : > { %v1600_v0 = vpop.eup %1599 }
 0x315   : > { %1003 = vst [vmem:[%s2112_s11 + $0x60] sm:$0xff] %v1600_v0 }
 0x316   : > { %v1602_v1 = vpop.eup %1601 }
 0x317   : > { %1006 = vst [vmem:[%s2112_s11 + $0x78] sm:$0xff] %v1602_v1 }
 0x318   : > { %v1604_v2 = vpop.eup %1603 }
 0x319   : > { %1005 = vst [vmem:[%s2112_s11 + $0x70] sm:$0xff] %v1604_v2 }
 0x31a   : > { %1724 = shalt.err (!%p1721_p10)
}
 0x31b   : > { %s1725_s10 = scalar_lea.hbm %s2133_s1, 2048  ;;  %s1729_s29 = scalar_lea.hbm %s2187_s7, 4096 }
 0x31c   : > { %p1726_p6 = scmp.ne.s32.totalorder %s2133_s1, %s1725_s10  ;;  %p1730_p3 = scmp.lt.s32.totalorder %s2133_s1, %s2187_s7 }
 0x31d   : > { %p1731_p11 = scmp.lt.s32.totalorder %s1729_s29, %s1725_s10 }
 0x31e   : > { %p1727_p4 = pnand %p1726_p6, %p2210_p1 }
 0x31f   : > { %p1732_p5 = por %p1731_p11, %p1730_p3 }
 0x320   : > { %p1728_p8 = pneg %p1727_p4 }
 0x322   : > { %p1733_p7 = pnand %p1732_p5, %p1728_p8 }
 0x324   : > { %1736 = shalt.err (!%p1733_p7)
}
 0x325   : > { %s1792_s18 = smov 128   ;;  %s1793_s23 = smov 8  }
 0x326   : > { %1474 = dma.vmem_to_hbm [thread:$0]  (%p2210_p1), %s2135_s22, 2048, %s2133_s1, %s1008_s16, %s1792_s18, %s1792_s18, %s1793_s23  }
 0x327 PF: > { %s1036_s12 = sand.u32 1, %s1771_s24   ;;  %p2211_p12 = scmp.ne.s32.totalorder %s2196_s8, 0 }
 0x328   : > { %p2212_p9 = scmp.ge.s32.totalorder %s1783_s27, 2  ;;  %s1037_s28 = scalar_lea.sflag [#allocation4], %s1036_s12 }
 0x32a   : > { %p1491_p13 = pnand %p2212_p9, %p2211_p12 }
 0x32c   : > { %p1492_p0 = pneg %p1491_p13 }
 0x32e   : > { %1766 = dma.done.wait (%p1492_p0), %s1037_s28, 2048  }
 0x32f   : > { %1768 = vsyncadd (%p1492_p0), %s1037_s28, 4294965248  ;;  %p22_p2 = scmp.ge.s32.totalorder %s1923_s14, 4   ;;  %s2213_s24 = smov %s1775_s25 }
 0x330   : > { %s2214_s25 = smov %s1779_s26  ;;  %s2215_s26 = smov %s1933_s17 }
 0x331   : > { %s2216_s27 = smov %s1923_s14  ;;  %24 = sbr.rel (!%p22_p2) target bundleno = 9 (0x9), region = 105 }
 0x336   :  { %1042 = vsyncpa [#allocation3], 1 }
 0x337   :  { %1044 = vsyncpa [#allocation3 + $0x1], 1 }
 0x338   :  { %1045 = vsyncpa [#allocation6], 1 }
 0x339   :  { %1046 = vsyncpa [#allocation9], 1 }
 0x33a   :  { %1047 = vsyncpa [#allocation4], 1 }
 0x33b   :  { %1049 = vsyncpa [#allocation4 + $0x1], 1 }

</bundles_post_ra>
